<compile_context>
chip_gen: v7x
topology: tpu7x:2x2x1
jax: 0.10.0
libtpu: 0.0.40
codegen_flags: <defaults>
</compile_context>

<pallas_src>
import math

import jax
import jax.numpy as jnp
from jax.experimental import pallas as pl
from jax.experimental.pallas import tpu as pltpu


def _make_pos_grid(h: int, w: int) -> jax.Array:
    # Same as the PyTorch buffer: meshgrid('xy') of linspace(-1, 1), row-major (h*W + w).
    pos_x, pos_y = jnp.meshgrid(
        jnp.linspace(-1.0, 1.0, w, dtype=jnp.float32),
        jnp.linspace(-1.0, 1.0, h, dtype=jnp.float32),
    )
    return jnp.stack([pos_x.reshape(-1), pos_y.reshape(-1)], axis=1)  # (H*W, 2)


def _encoder_head_kernel(feat_ref, wkp_ref, bkp_ref, pos_ref, wout_ref, bout_ref,
                         out_ref):
    # feat_ref : (TB, C, HW)  native backbone layout (C on sublanes, HW on lanes)
    # wkp_ref  : (K, C)       SpatialSoftmax 1x1-conv weight (PyTorch layout)
    # bkp_ref  : (K, 1)       conv bias (neutral under softmax, kept for fidelity)
    # pos_ref  : (8, HW)      rows = [pos_x, pos_y, ones, 0, 0, 0, 0, 0]
    # wout_ref : (2, K, D)    [Wx ; Wy] of the output Linear (de-interleaved)
    # bout_ref : (1, D)
    # out_ref  : (TB, 1, D)
    f32 = jnp.float32
    tb = feat_ref.shape[0]
    k, c = wkp_ref.shape
    hw = feat_ref.shape[2]
    d = bout_ref.shape[-1]

    feat = feat_ref[...]                                          # (TB, C, HW)

    # 1x1 conv (channel mixing): TB batched MXU matmuls (K, C) @ (C, HW).
    wkp_b = jnp.broadcast_to(wkp_ref[...], (tb, k, c))
    logits = jnp.einsum("bkc,bch->bkh", wkp_b, feat,
                        preferred_element_type=f32)               # (TB, K, HW)
    logits = logits + bkp_ref[...][None, :, :]

    # Channel-wise softmax over the spatial axis (lanes), unnormalized.
    m = jnp.max(logits, axis=-1, keepdims=True)                   # (TB, K, 1)
    e = jnp.exp(logits - m)                                       # (TB, K, HW)  EUP

    # Expected coords + softmax denominator in one stacked MXU pass per image:
    # rows 0/1/2 of `moments` are sum(e*x), sum(e*y), sum(e).
    pos_b = jnp.broadcast_to(pos_ref[...], (tb, 8, hw))
    moments = jnp.einsum("bph,bkh->bpk", pos_b, e,
                         preferred_element_type=f32)              # (TB, 8, K)

    denom = moments[:, 2:3, :]                                    # (TB, 1, K) > 0
    r = pl.reciprocal(denom, approx=True)                         # EUP
    r = r * (2.0 - denom * r)                                     # one Newton step
    ex = moments[:, 0:1, :] * r                                   # (TB, 1, K)
    ey = moments[:, 1:2, :] * r                                   # (TB, 1, K)

    # Output Linear (+ bias) + ReLU: out = relu(ex @ Wx + ey @ Wy + b).
    wout = wout_ref[...]
    wx_b = jnp.broadcast_to(wout[0], (tb, k, d))
    wy_b = jnp.broadcast_to(wout[1], (tb, k, d))
    y = (jnp.einsum("bok,bkd->bod", ex, wx_b, preferred_element_type=f32)
         + jnp.einsum("bok,bkd->bod", ey, wy_b, preferred_element_type=f32)
         + bout_ref[...][None, :, :])                             # (TB, 1, D)
    out_ref[...] = jnp.maximum(y, 0.0)


def _pick_batch_tile(batch: int, c: int, hw: int, itemsize: int) -> int:
    # Cap TB so the double-buffered feature tile stays well under v7x's 64 MiB
    # physical VMEM (v5e/v6e have 128 MiB and could take ~2x more).
    budget = 20 << 20
    per_image = max(2 * c * hw * itemsize, 1)
    tb = max(1, min(batch, budget // per_image))
    if batch > 1:
        # Keep >= 2 grid steps so ("parallel",) can split work across v7x's 2 TCs.
        tb = min(tb, pl.cdiv(batch, 2))
    while batch % tb:          # keep blocks even (no ragged last block)
        tb -= 1
    return tb


def diffusion_rgb_encoder_head(features: jax.Array,
                               w_kp: jax.Array, b_kp: jax.Array,
                               w_out: jax.Array, b_out: jax.Array) -> jax.Array:
    """Fused SpatialSoftmax pool + flatten + Linear + ReLU.

    features : (B, C, H, W) backbone feature maps (f32 or bf16)
    w_kp     : (K, C)  SpatialSoftmax 1x1-conv weight (kernel_size=1 squeezed)
    b_kp     : (K,)
    w_out    : (D, D)  output Linear weight (D = 2*K), PyTorch layout (out, in)
    b_out    : (D,)
    returns  : (B, D) float32
    """
    B, C, H, W = features.shape
    K = w_kp.shape[0]
    D = w_out.shape[0]
    HW = H * W
    assert D == 2 * K, "out Linear must have in_features == 2 * num_keypoints"

    f32 = jnp.float32
    itemsize = jnp.dtype(features.dtype).itemsize

    # ---- one-time layout plumbing (tiny tensors only; the big feature map is
    # ---- passed through untouched in its native layout) ----
    feat = features.reshape(B, C, HW)                             # free reshape
    wkp = w_kp.reshape(K, C).astype(features.dtype)               # matmul-input dtype
    bkp = b_kp.astype(f32).reshape(K, 1)

    pos_grid = _make_pos_grid(H, W)                               # (HW, 2)
    pos8 = (jnp.zeros((8, HW), f32)
            .at[0].set(pos_grid[:, 0])
            .at[1].set(pos_grid[:, 1])
            .at[2].set(1.0))

    # w_out columns are interleaved [x0, y0, x1, y1, ...]; de-interleave into
    # Wx, Wy (each (K, D)) so the kernel never permutes lanes.
    wx = jnp.transpose(w_out.astype(f32)[:, 0::2], (1, 0))        # (K, D)
    wy = jnp.transpose(w_out.astype(f32)[:, 1::2], (1, 0))        # (K, D)
    wout2 = jnp.stack([wx, wy], axis=0)                           # (2, K, D)
    bout = b_out.astype(f32).reshape(1, D)

    TB = _pick_batch_tile(B, C, HW, itemsize)
    grid = (B // TB,)

    # VMEM budget / advisory cost (this head is tiny next to the conv backbone).
    feat_tile_bytes = TB * C * HW * itemsize
    const_bytes = 4 * (K * C + K + 8 * HW + 2 * K * D + D)
    inter_bytes = 4 * (2 * TB * K * HW + TB * K * C + 2 * TB * K * D)
    vmem_need = 2 * feat_tile_bytes + const_bytes + 2 * TB * D * 4 + inter_bytes
    vmem_limit = int(min(max(2 * vmem_need, 32 << 20), 60 << 20))

    flops = int(B * (2 * K * C * HW + 2 * 8 * HW * K + 2 * 2 * K * D + 4 * K * HW))
    transcendentals = int(B * (K * HW + K))
    bytes_accessed = int(B * C * HW * itemsize + B * D * 4 + const_bytes)

    const_kw = dict(pipeline_mode=pl.Buffered(1))   # grid-invariant: single buffer

    out = pl.pallas_call(
        _encoder_head_kernel,
        out_shape=jax.ShapeDtypeStruct((B, 1, D), f32),
        grid=grid,
        in_specs=[
            pl.BlockSpec((TB, C, HW), lambda b: (b, 0, 0)),          # streaming input
            pl.BlockSpec((K, C), lambda b: (0, 0), **const_kw),
            pl.BlockSpec((K, 1), lambda b: (0, 0), **const_kw),
            pl.BlockSpec((8, HW), lambda b: (0, 0), **const_kw),
            pl.BlockSpec((2, K, D), lambda b: (0, 0, 0), **const_kw),
            pl.BlockSpec((1, D), lambda b: (0, 0), **const_kw),
        ],
        out_specs=pl.BlockSpec((TB, 1, D), lambda b: (b, 0, 0)),
        compiler_params=pltpu.CompilerParams(
            dimension_semantics=("parallel",),        # shard batch tiles across TCs
            vmem_limit_bytes=vmem_limit),
        cost_estimate=pl.CostEstimate(flops=flops,
                                      transcendentals=transcendentals,
                                      bytes_accessed=bytes_accessed),
    )(feat, wkp, bkp, pos8, wout2, bout)
    return out.reshape(B, D)


def _reference(features, w_kp, b_kp, w_out, b_out):
    """Pure-JAX reference matching the PyTorch forward (SpatialSoftmax -> flatten -> Linear -> ReLU)."""
    B, C, H, W = features.shape
    K = w_kp.shape[0]
    hp = jax.lax.Precision.HIGHEST
    feat_kp = jnp.einsum("kc,bchw->bkhw", w_kp, features.astype(jnp.float32),
                         precision=hp) + b_kp[None, :, None, None]
    flat = feat_kp.reshape(B * K, H * W)
    attn = jax.nn.softmax(flat, axis=-1)
    pos_grid = _make_pos_grid(H, W)
    xy = jnp.dot(attn, pos_grid, precision=hp)               # (B*K, 2)
    kp = xy.reshape(B, K * 2)                                # interleaved x0,y0,x1,y1,...
    return jnp.maximum(jnp.dot(kp, w_out.T, precision=hp) + b_out, 0.0)


if __name__ == "__main__":
    key = jax.random.PRNGKey(0)
    # Small stand-in shapes: backbone feature map (B, C, H, W), K keypoints, D = 2K.
    # B=8 so the batch-tiled grid has >= 2 steps (TB=4 here).
    B, C, H, W, K = 8, 64, 8, 8, 32
    D = 2 * K
    k1, k2, k3, k4, k5 = jax.random.split(key, 5)
    features = jax.random.normal(k1, (B, C, H, W), dtype=jnp.float32)
    w_kp = jax.random.normal(k2, (K, C), dtype=jnp.float32) / math.sqrt(C)
    b_kp = jax.random.normal(k3, (K,), dtype=jnp.float32) * 0.1
    w_out = jax.random.normal(k4, (D, D), dtype=jnp.float32) / math.sqrt(D)
    b_out = jax.random.normal(k5, (D,), dtype=jnp.float32) * 0.1

    out = diffusion_rgb_encoder_head(features, w_kp, b_kp, w_out, b_out)
    out = jax.block_until_ready(out)

    ref = _reference(features, w_kp, b_kp, w_out, b_out)
    assert out.shape == (B, D), out.shape
    max_err = float(jnp.max(jnp.abs(out - ref)))
    assert jnp.allclose(out, ref, atol=1e-4, rtol=1e-4), max_err
    print("KERNEL_OK")
</pallas_src>

<mosaic_0001>
module attributes {stable_mosaic.version = 11 : i64} {
  func.func @_encoder_head_kernel(%arg0: i32, %arg1: memref<4x64x64xf32, #tpu.memory_space<vmem>>, %arg2: memref<32x64xf32, #tpu.memory_space<vmem>>, %arg3: memref<32x1xf32, #tpu.memory_space<vmem>>, %arg4: memref<8x64xf32, #tpu.memory_space<vmem>>, %arg5: memref<2x32x64xf32, #tpu.memory_space<vmem>>, %arg6: memref<1x64xf32, #tpu.memory_space<vmem>>, %arg7: memref<4x1x64xf32, #tpu.memory_space<vmem>>) attributes {dimension_semantics = [#tpu.dimension_semantics<parallel>], iteration_bounds = array<i64: 2>, scalar_prefetch = 0 : i64, scratch_operands = 0 : i64, tpu.core_type = #tpu.core_type<tc>, window_params = [{transform_indices = @transform_0, window_bounds = array<i64: 4, 64, 64>}, {pipeline_mode = #tpu.pipeline_mode<synchronous>, transform_indices = @transform_1, window_bounds = array<i64: 32, 64>}, {pipeline_mode = #tpu.pipeline_mode<synchronous>, transform_indices = @transform_2, window_bounds = array<i64: 32, 1>}, {pipeline_mode = #tpu.pipeline_mode<synchronous>, transform_indices = @transform_3, window_bounds = array<i64: 8, 64>}, {pipeline_mode = #tpu.pipeline_mode<synchronous>, transform_indices = @transform_4, window_bounds = array<i64: 2, 32, 64>}, {pipeline_mode = #tpu.pipeline_mode<synchronous>, transform_indices = @transform_5, window_bounds = array<i64: 1, 64>}, {transform_indices = @transform_6, window_bounds = array<i64: 4, 1, 64>}]} {
    %c0 = arith.constant 0 : index
    %c0_0 = arith.constant 0 : index
    %c0_1 = arith.constant 0 : index
    %0 = vector.load %arg1[%c0, %c0_0, %c0_1] : memref<4x64x64xf32, #tpu.memory_space<vmem>>, vector<4x64x64xf32>
    %c0_2 = arith.constant 0 : index
    %c0_3 = arith.constant 0 : index
    %1 = vector.load %arg2[%c0_2, %c0_3] : memref<32x64xf32, #tpu.memory_space<vmem>>, vector<32x64xf32>
    %2 = vector.shape_cast %1 : vector<32x64xf32> to vector<1x32x64xf32>
    %3 = vector.broadcast %2 : vector<1x32x64xf32> to vector<4x32x64xf32>
    "tpu.trace_start"() <{level = 10 : i32, message = "bkc,bch->bkh"}> : () -> ()
    %cst = arith.constant dense<0.000000e+00> : vector<4x32x64xf32>
    %4 = tpu.matmul %3, %0, %cst {dimension_numbers = #tpu.dot_dimension_numbers<[2], [1], [1], [2], [0, 0, 0, 1, 1, 2], [0], [0]>} : vector<4x32x64xf32>, vector<4x64x64xf32>, vector<4x32x64xf32> -> vector<4x32x64xf32>
    "tpu.trace_stop"() : () -> ()
    %c0_4 = arith.constant 0 : index
    %c0_5 = arith.constant 0 : index
    %5 = vector.load %arg3[%c0_4, %c0_5] : memref<32x1xf32, #tpu.memory_space<vmem>>, vector<32x1xf32>
    %6 = vector.shape_cast %5 : vector<32x1xf32> to vector<1x32x1xf32>
    %7 = vector.broadcast %6 : vector<1x32x1xf32> to vector<4x32x64xf32>
    %8 = arith.addf %4, %7 : vector<4x32x64xf32>
    %cst_6 = arith.constant dense<0xFF800000> : vector<4x32xf32>
    %9 = vector.multi_reduction <maximumf>, %8, %cst_6 [2] : vector<4x32x64xf32> to vector<4x32xf32>
    %10 = vector.shape_cast %9 : vector<4x32xf32> to vector<4x32x1xf32>
    %11 = vector.broadcast %10 : vector<4x32x1xf32> to vector<4x32x64xf32>
    %12 = arith.subf %8, %11 : vector<4x32x64xf32>
    %13 = math.exp %12 : vector<4x32x64xf32>
    %c0_7 = arith.constant 0 : index
    %c0_8 = arith.constant 0 : index
    %14 = vector.load %arg4[%c0_7, %c0_8] : memref<8x64xf32, #tpu.memory_space<vmem>>, vector<8x64xf32>
    %15 = vector.shape_cast %14 : vector<8x64xf32> to vector<1x8x64xf32>
    %16 = vector.broadcast %15 : vector<1x8x64xf32> to vector<4x8x64xf32>
    "tpu.trace_start"() <{level = 10 : i32, message = "bph,bkh->bpk"}> : () -> ()
    %cst_9 = arith.constant dense<0.000000e+00> : vector<4x8x32xf32>
    %17 = tpu.matmul %16, %13, %cst_9 {dimension_numbers = #tpu.dot_dimension_numbers<[2], [2], [1], [1], [0, 0, 0, 1, 1, 1], [0], [0]>} : vector<4x8x64xf32>, vector<4x32x64xf32>, vector<4x8x32xf32> -> vector<4x8x32xf32>
    "tpu.trace_stop"() : () -> ()
    %18 = vector.extract_strided_slice %17 {offsets = [0, 2, 0], sizes = [4, 1, 32], strides = [1, 1, 1]} : vector<4x8x32xf32> to vector<4x1x32xf32>
    %19 = tpu.reciprocal %18 {approx = true} : vector<4x1x32xf32> -> vector<4x1x32xf32>
    %20 = arith.mulf %18, %19 : vector<4x1x32xf32>
    %cst_10 = arith.constant 2.000000e+00 : f32
    %21 = vector.broadcast %cst_10 : f32 to vector<4x1x32xf32>
    %22 = arith.subf %21, %20 : vector<4x1x32xf32>
    %23 = arith.mulf %19, %22 : vector<4x1x32xf32>
    %24 = vector.extract_strided_slice %17 {offsets = [0, 0, 0], sizes = [4, 1, 32], strides = [1, 1, 1]} : vector<4x8x32xf32> to vector<4x1x32xf32>
    %25 = arith.mulf %24, %23 : vector<4x1x32xf32>
    %26 = vector.extract_strided_slice %17 {offsets = [0, 1, 0], sizes = [4, 1, 32], strides = [1, 1, 1]} : vector<4x8x32xf32> to vector<4x1x32xf32>
    %27 = arith.mulf %26, %23 : vector<4x1x32xf32>
    %c0_11 = arith.constant 0 : index
    %c0_12 = arith.constant 0 : index
    %c0_13 = arith.constant 0 : index
    %28 = vector.load %arg5[%c0_11, %c0_12, %c0_13] : memref<2x32x64xf32, #tpu.memory_space<vmem>>, vector<2x32x64xf32>
    %29 = vector.extract_strided_slice %28 {offsets = [0, 0, 0], sizes = [1, 32, 64], strides = [1, 1, 1]} : vector<2x32x64xf32> to vector<1x32x64xf32>
    %30 = vector.shape_cast %29 : vector<1x32x64xf32> to vector<32x64xf32>
    %31 = vector.shape_cast %30 : vector<32x64xf32> to vector<1x32x64xf32>
    %32 = vector.broadcast %31 : vector<1x32x64xf32> to vector<4x32x64xf32>
    %33 = vector.extract_strided_slice %28 {offsets = [1, 0, 0], sizes = [1, 32, 64], strides = [1, 1, 1]} : vector<2x32x64xf32> to vector<1x32x64xf32>
    %34 = vector.shape_cast %33 : vector<1x32x64xf32> to vector<32x64xf32>
    %35 = vector.shape_cast %34 : vector<32x64xf32> to vector<1x32x64xf32>
    %36 = vector.broadcast %35 : vector<1x32x64xf32> to vector<4x32x64xf32>
    "tpu.trace_start"() <{level = 10 : i32, message = "bok,bkd->bod"}> : () -> ()
    %cst_14 = arith.constant dense<0.000000e+00> : vector<4x1x64xf32>
    %37 = tpu.matmul %25, %32, %cst_14 {dimension_numbers = #tpu.dot_dimension_numbers<[2], [1], [1], [2], [0, 0, 0, 1, 1, 2], [0], [0]>} : vector<4x1x32xf32>, vector<4x32x64xf32>, vector<4x1x64xf32> -> vector<4x1x64xf32>
    %cst_15 = arith.constant dense<0.000000e+00> : vector<4x1x64xf32>
    %38 = tpu.matmul %27, %36, %cst_15 {dimension_numbers = #tpu.dot_dimension_numbers<[2], [1], [1], [2], [0, 0, 0, 1, 1, 2], [0], [0]>} : vector<4x1x32xf32>, vector<4x32x64xf32>, vector<4x1x64xf32> -> vector<4x1x64xf32>
    "tpu.trace_stop"() : () -> ()
    %39 = arith.addf %37, %38 : vector<4x1x64xf32>
    %c0_16 = arith.constant 0 : index
    %c0_17 = arith.constant 0 : index
    %40 = vector.load %arg6[%c0_16, %c0_17] : memref<1x64xf32, #tpu.memory_space<vmem>>, vector<1x64xf32>
    %41 = vector.shape_cast %40 : vector<1x64xf32> to vector<1x1x64xf32>
    %42 = vector.broadcast %41 : vector<1x1x64xf32> to vector<4x1x64xf32>
    %43 = arith.addf %39, %42 : vector<4x1x64xf32>
    %cst_18 = arith.constant 0.000000e+00 : f32
    %44 = vector.broadcast %cst_18 : f32 to vector<4x1x64xf32>
    %45 = arith.maximumf %43, %44 : vector<4x1x64xf32>
    %c0_19 = arith.constant 0 : index
    %c0_20 = arith.constant 0 : index
    %c0_21 = arith.constant 0 : index
    %46 = vector.load %arg7[%c0_19, %c0_20, %c0_21] : memref<4x1x64xf32, #tpu.memory_space<vmem>>, vector<4x1x64xf32>
    tpu.vector_store %arg7[%c0_19, %c0_20, %c0_21], %45 {strides = array<i32>} : memref<4x1x64xf32, #tpu.memory_space<vmem>>, vector<4x1x64xf32>,
    return
  }
  func.func @transform_0(%arg0: i32) -> (i32, i32, i32) {
    %c0_i32 = arith.constant 0 : i32
    %c0_i32_0 = arith.constant 0 : i32
    %c0_i32_1 = arith.constant 0 : i32
    return %arg0, %c0_i32, %c0_i32_0 : i32, i32, i32
  }
  func.func @transform_1(%arg0: i32) -> (i32, i32) {
    %c0_i32 = arith.constant 0 : i32
    %c0_i32_0 = arith.constant 0 : i32
    %c0_i32_1 = arith.constant 0 : i32
    return %c0_i32, %c0_i32_0 : i32, i32
  }
  func.func @transform_2(%arg0: i32) -> (i32, i32) {
    %c0_i32 = arith.constant 0 : i32
    %c0_i32_0 = arith.constant 0 : i32
    %c0_i32_1 = arith.constant 0 : i32
    return %c0_i32, %c0_i32_0 : i32, i32
  }
  func.func @transform_3(%arg0: i32) -> (i32, i32) {
    %c0_i32 = arith.constant 0 : i32
    %c0_i32_0 = arith.constant 0 : i32
    %c0_i32_1 = arith.constant 0 : i32
    return %c0_i32, %c0_i32_0 : i32, i32
  }
  func.func @transform_4(%arg0: i32) -> (i32, i32, i32) {
    %c0_i32 = arith.constant 0 : i32
    %c0_i32_0 = arith.constant 0 : i32
    %c0_i32_1 = arith.constant 0 : i32
    %c0_i32_2 = arith.constant 0 : i32
    return %c0_i32, %c0_i32_0, %c0_i32_1 : i32, i32, i32
  }
  func.func @transform_5(%arg0: i32) -> (i32, i32) {
    %c0_i32 = arith.constant 0 : i32
    %c0_i32_0 = arith.constant 0 : i32
    %c0_i32_1 = arith.constant 0 : i32
    return %c0_i32, %c0_i32_0 : i32, i32
  }
  func.func @transform_6(%arg0: i32) -> (i32, i32, i32) {
    %c0_i32 = arith.constant 0 : i32
    %c0_i32_0 = arith.constant 0 : i32
    %c0_i32_1 = arith.constant 0 : i32
    return %arg0, %c0_i32, %c0_i32_0 : i32, i32, i32
  }
}

</mosaic_0001>

<bundles_post_ra>
// kernel: tpu_custom_call.1
= control target key start
LH: loop header
LB: loop body
LE: loop exit
PB: predicated region body
PF: predicated region fallthrough
CT: control target
= control target key end

     0   :  { %11 = vsyncpa [#allocation3], 0  ;;  %s3184_s0 = inlined_call_operand.hbm [shape: f32[8,64,64], index: 0, kind: input, shape index: {}]   ;;  %s3185_s1 = inlined_call_operand.vmem [shape: f32[32,64], index: 1, kind: input, shape index: {}]   ;;  %s3186_s2 = inlined_call_operand.vmem [shape: f32[32,1], index: 2, kind: input, shape index: {}]   ;;  %s3187_s3 = inlined_call_operand.vmem [shape: f32[8,64], index: 3, kind: input, shape index: {}]   ;;  %s3188_s4 = inlined_call_operand.hbm [shape: f32[2,32,64], index: 4, kind: input, shape index: {}]   ;;  %s3189_s5 = inlined_call_operand.vmem [shape: f32[1,64], index: 5, kind: input, shape index: {}]   ;;  %s3190_s6 = inlined_call_operand.hbm [shape: f32[8,1,64], index: 6, kind: output, shape index: {}]  }
   0x1   :  { %13 = vsyncpa [#allocation3 + $0x1], 0 }
   0x2   :  { %14 = vsyncpa [#allocation6], 0 }
   0x3   :  { %15 = vsyncpa [#allocation4], 0 }
   0x4   :  { %17 = vsyncpa [#allocation4 + $0x1], 0  ;;  %s2700_s21 = smov 0   ;;  %s2702_s22 = smov 0  }
   0x5   :  { %s2704_s23 = smov 0   ;;  %s2706_s24 = smov 0  }
   0x6 LB: > { %s2721_s25 = sadd.s32 4294967295, %s2652_s24   ;;  %s1881_s26 = sadd.s32 4294967294, %s2652_s24   ;;  %s2652_s24 = sphi %s2706_s24, %s3212_s24   ;;  %s2648_s23 = sphi %s2704_s23, %s3211_s23   ;;  %s2644_s22 = sphi %s2702_s22, %s3210_s22   ;;  %s2640_s21 = sphi %s2700_s21, %s3209_s21  }
   0x7   : > { %p43_p0 = scmp.ne.s32.totalorder %s2644_s22, %s2640_s21  ;;  %p3191_p1 = scmp.eq.s32.totalorder %s2721_s25, 0 }
   0x8   : > { %p178_p3 = scmp.eq.s32.totalorder %s1881_s26, 1  ;;  %p1882_p5 = scmp.ge.s32.totalorder %s2652_s24, 1 }
   0x9   : > { %p2730_p4 = por %p3191_p1, %p43_p0  ;;  %p185_p7 = scmp.lt.s32.totalorder %s2652_s24, 3 }
   0xa   : > { %p2735_p6 = por %p178_p3, %p43_p0  ;;  %s2654_s30 = smov [#allocation5]  }
   0xb   : > { %s3194_s27 = scalar_select %p2730_p4, 1, 0 }
   0xc   : > { %s3195_s28 = scalar_select %p2735_p6, 1, 0 }
   0xd   : > { %p2740_p8 = pnand %p1882_p5, %p185_p7  ;;  %s206_s7 = sshll.u32 %s2654_s30, 4  ;;  %s2744_s7 = int_to_ptr.vmem [resolvable:$true] %s206_s7 }
   0xe   : > { %s2756_s9 = sadd.s32 1, %s2652_s24   ;;  %s30_s10 = sadd.s32 1, %s2648_s23 }
   0xf   : > { %s3196_s29 = scalar_select %p2740_p8, 1, 0 }
  0x10   : > { %p2425_p9 = pneg %p2740_p8  ;;  %s27_s11 = ssub.s32 %s2652_s24, %s2756_s9 }
  0x11   : > { %s2524_s14 = scalar_lea.hbm %s3188_s4, 1024 }
  0x12   : > { %p2751_p11 = pnand %p2425_p9, %p3191_p1  ;;  %p2525_p12 = scmp.ne.s32.totalorder %s3188_s4, %s2524_s14 }
  0x13   : > { %p2531_p5 = scmp.lt.u32.totalorder %s2524_s14, %s3188_s4 }
  0x14   : > { %p2526_p13 = pneg %p2751_p11 }
  0x16   : > { %p2527_p0 = pnand %p2526_p13, %p2525_p12 }
  0x18   : > { %p2528_p3 = pneg %p2527_p0 }
  0x1a   : > { %p2533_p7 = pnand %p2531_p5, %p2528_p3 }
  0x1c   : > { %2536 = shalt.err (!%p2533_p7)
}
  0x1d   : > { %s2537_s19 = scalar_lea.vmem %s2744_s7, 1024  ;;  %p2545_p2 = scmp.lt.s32.totalorder %s2744_s7, %s2744_s7 }
  0x1e   : > { %p2538_p9 = scmp.ne.s32.totalorder %s2744_s7, %s2537_s19  ;;  %p2546_p6 = scmp.lt.s32.totalorder %s2537_s19, %s2537_s19 }
  0x20   : > { %p2540_p10 = pnand %p2538_p9, %p2526_p13  ;;  %p2547_p4 = por %p2546_p6, %p2545_p2 }
  0x22   : > { %p2541_p1 = pneg %p2540_p10 }
  0x24   : > { %p2548_p8 = pnand %p2547_p4, %p2541_p1 }
  0x26   : > { %2551 = shalt.err (!%p2548_p8)
}
  0x27   : > { %s2655_s20 = smov 128   ;;  %s2656_s26 = smov 8  }
  0x28   : > { %2428 = dma.hbm_to_vmem [thread:$0]  (!%p2751_p11), %s3188_s4, 1024, %s2744_s7, [#allocation6], %s2655_s20, %s2655_s20, %s2656_s26  }
  0x29   : > { %p28_p1 = scmp.eq.s32.totalorder %s27_s11, 0  ;;  %p37_p2 = scmp.ne.s32.totalorder %s2648_s23, %s2644_s22 }
  0x2a   : > { %p38_p4 = scmp.eq.s32.totalorder %s2652_s24, 0  ;;  %p2438_p6 = scmp.lt.s32.totalorder %s2652_s24, 2 }
  0x2b   : > { %s2790_s13 = scalar_select %p28_p1, %s2648_s23, %s30_s10  }
  0x2c   : > { %p39_p8 = por %p38_p4, %p37_p2  ;;  %p3198_p10 = scmp.eq.s32.totalorder %s2721_s25, 1 }
  0x2d   : > { %s223_s8 = sand.u32 1, %s2648_s23   ;;  %s1943_s15 = sshll.u32 %s2652_s24, 12 }
  0x2e   : > { %p2794_p12 = por %p3198_p10, %p37_p2  ;;  %s1885_s16 = sshll.u32 %s223_s8, 8 }
  0x2f   : > { %s2803_s19 = scalar_lea.hbm %s3184_s0, %s1943_s15  ;;  %s227_s7 = scalar_lea.vmem [#allocation2], %s1885_s16 }
  0x30   : > { %s235_s10 = sshll.u32 %s227_s7, 4  ;;  %p2805_p11 = pnand %p2438_p6, %p39_p8  ;;  %s2809_s10 = int_to_ptr.vmem [resolvable:$true] %s235_s10 }
  0x31   : > { %s2811_s30 = scalar_lea.sflag [#allocation3], %s223_s8  ;;  %s2552_s12 = scalar_lea.hbm %s2803_s19, 4096 }
  0x32   : > { %p2553_p13 = scmp.ne.s32.totalorder %s2803_s19, %s2552_s12  ;;  %p2554_p0 = pneg %p2805_p11 }
  0x33   : > { %s2557_s17 = scalar_lea.hbm %s3184_s0, 8192  ;;  %p2558_p7 = scmp.lt.u32.totalorder %s2803_s19, %s3184_s0 }
  0x34   : > { %p2555_p3 = pnand %p2554_p0, %p2553_p13  ;;  %p2559_p9 = scmp.lt.u32.totalorder %s2557_s17, %s2552_s12 }
  0x35   : > { %p2561_p2 = scmp.lt.u32.totalorder %s2552_s12, %s2803_s19 }
  0x36   : > { %p2556_p5 = pneg %p2555_p3  ;;  %p2560_p1 = por %p2559_p9, %p2558_p7 }
  0x38   : > { %p2562_p4 = por %p2561_p2, %p2560_p1 }
  0x3a   : > { %p2563_p6 = pnand %p2562_p4, %p2556_p5 }
  0x3c   : > { %2566 = shalt.err (!%p2563_p6)
}
  0x3d   : > { %s2567_s8 = scalar_lea.vmem %s2809_s10, 4096  ;;  %s2657_s15 = smov [#allocation2]  }
  0x3e   : > { %p2568_p8 = scmp.ne.s32.totalorder %s2809_s10, %s2567_s8  ;;  %s2572_s16 = sshll.u32 %s2657_s15, 4  ;;  %s2573_s16 = int_to_ptr.vmem [resolvable:$false] %s2572_s16 }
  0x3f   : > { %s2574_s18 = scalar_lea.vmem %s2573_s16, 8192  ;;  %p2575_p3 = scmp.lt.s32.totalorder %s2809_s10, %s2573_s16 }
  0x40   : > { %p2570_p10 = pnand %p2568_p8, %p2554_p0  ;;  %p2576_p7 = scmp.lt.s32.totalorder %s2574_s18, %s2567_s8 }
  0x42   : > { %p2571_p13 = pneg %p2570_p10  ;;  %p2577_p9 = por %p2576_p7, %p2575_p3 }
  0x44   : > { %p2578_p1 = pnand %p2577_p9, %p2571_p13 }
  0x46   : > { %2581 = shalt.err (!%p2578_p1)
}
  0x47   : > { %2432 = dma.hbm_to_vmem [thread:$0]  (!%p2805_p11), %s2803_s19, 4096, %s2809_s10, %s2811_s30, %s2655_s20, %s2655_s20, %s2656_s26  }
  0x48   : > { %p3201_p0 = scmp.ne.s32.totalorder %s3196_s29, 0 }
  0x49   : > { %s2845_s12 = sand.u32 (!%p3201_p0), 1, %s2644_s22   ;;  %p3202_p5 = scmp.ne.s32.totalorder (!%p3201_p0), %s3194_s27, 0 }
  0x4a   : > { %247 = sbr.rel (%p3201_p0) target bundleno = 1002 (0x3ea), region = 44  ;;  %s1890_s17 = sshll.u32 (!%p3201_p0), %s2845_s12, 8 }
  0x4b   : > { %s250_s7 = scalar_lea.sflag (!%p3201_p0), [#allocation3], %s2845_s12  ;;  %s2849_s8 = scalar_lea.vmem (!%p3201_p0), [#allocation2], %s1890_s17 }
  0x51   : > { %2627 = dma.done.wait (%p3202_p5), %s250_s7, 4096  }
  0x52   : > { %2629 = vsyncadd (%p3202_p5), %s250_s7, 4294963200  ;;  %p3203_p11 = scmp.eq.s32.totalorder %s2721_s25, 0 }
  0x54   : > { %2631 = dma.done.wait (%p3203_p11), [#allocation6], 1024   ;;  %p3204_p2 = pmov %p3203_p11 }
  0x55   : > { %v2658_v0 = vmov 0   ;;  %v288_v1 = vld [vmem:[%s2849_s8] sm:$0xff]  ;;  %v289_v2 = vld [vmem:[%s2849_s8 + $0x8] sm:$0xff]  ;;  %v290_v6 = vld [vmem:[%s2849_s8 + $0x10] sm:$0xff]  ;;  %vm348_vm0 = vcmask 523264   ;;  %vm2660_vm1 = vmmov 0  }
  0x56   : > { %2633 = vsyncadd (%p3204_p2), [#allocation6], 4294966272  ;;  %2482 = vset.pattern.permute.xlu0 %v2658_v0  ;;  %2483 = vset.pattern.permute.xlu1 %v2658_v0  ;;  %v296_v3 = vld [vmem:[%s2849_s8 + $0x40] sm:$0xff]  ;;  %v2273_v4 = vpack.c.bf16 %v289_v2, %v288_v1  ;;  %v297_v5 = vld [vmem:[%s2849_s8 + $0x48] sm:$0xff]  ;;  %vm1183_vm3 = vcmask 261120   ;;  %s1892_s11 = sshll.u32 %s2845_s12, 2 }
  0x57   : > { %v291_v7 = vld [vmem:[%s2849_s8 + $0x18] sm:$0xff]  ;;  %v2289_v8 = vpack.c.bf16 %v297_v5, %v296_v3  ;;  %v298_v10 = vld [vmem:[%s2849_s8 + $0x50] sm:$0xff]  ;;  %v292_v12 = vld [vmem:[%s2849_s8 + $0x20] sm:$0xff]  ;;  %vm1779_vm4 = vcmask 516096   ;;  %s285_s30 = scalar_lea.vmem [#allocation7], %s1892_s11  ;;  %s1944_s16 = sshll.u32 %s2721_s25, 6 }
  0x58   : > { %v2277_v9 = vpack.c.bf16 %v291_v7, %v290_v6  ;;  %v299_v11 = vld [vmem:[%s2849_s8 + $0x58] sm:$0xff]  ;;  %2274 = vmatprep.subr.bf16.mxu0 %v2273_v4  ;;  %v293_v14 = vld [vmem:[%s2849_s8 + $0x28] sm:$0xff]  ;;  %v300_v15 = vld [vmem:[%s2849_s8 + $0x60] sm:$0xff]  ;;  %s1798_s15 = sshll.u32 %s285_s30, 4  ;;  %s3139_s7 = scalar_lea.hbm %s3190_s6, %s1944_s16  ;;  %s3133_s15 = int_to_ptr.vmem [resolvable:$true] %s1798_s15 }
  0x59   : > { %v2293_v13 = vpack.c.bf16 %v299_v11, %v298_v10  ;;  %v301_v16 = vld [vmem:[%s2849_s8 + $0x68] sm:$0xff]  ;;  %2290 = vmatprep.subr.bf16.mxu1 %v2289_v8  ;;  %2276 = vmatpush3.bf16.msra.mxu0 %v2273_v4  ;;  %v2281_v17 = vpack.c.bf16 %v293_v14, %v292_v12  ;;  %v2874_v18 = vld [vmem:[%s3185_s1] sm:$0xff]  ;;  %v294_v20 = vld [vmem:[%s2849_s8 + $0x30] sm:$0xff]  ;;  %s1785_s27 = scalar_lea.sflag [#allocation4], %s2845_s12  ;;  %s2582_s29 = scalar_lea.vmem %s3133_s15, 64 }
  0x5a   : > { %2292 = vmatpush3.bf16.msra.mxu1 %v2289_v8  ;;  %2278 = vmatprep.subr.bf16.mxu0 %v2277_v9  ;;  %v2297_v19 = vpack.c.bf16 %v301_v16, %v300_v15  ;;  %v295_v21 = vld [vmem:[%s2849_s8 + $0x38] sm:$0xff]  ;;  %v302_v22 = vld [vmem:[%s2849_s8 + $0x70] sm:$0xff]  ;;  %v304_v26 = vld [vmem:[%s2849_s8 + $0x80] sm:$0xff]  ;;  %p2583_p4 = scmp.ne.s32.totalorder %s3133_s15, %s2582_s29  ;;  %s2662_s25 = smov [#allocation7]  }
  0x5b   : > { %2294 = vmatprep.subr.bf16.mxu1 %v2293_v13  ;;  %2069 = vmatprep.mubr.msk.f32.mxu0 %vm348_vm0, %v2874_v18  ;;  %v303_v23 = vld [vmem:[%s2849_s8 + $0x78] sm:$0xff]  ;;  %v2285_v24 = vpack.c.bf16 %v295_v21, %v294_v20  ;;  %v305_v27 = vld [vmem:[%s2849_s8 + $0x88] sm:$0xff]  ;;  %v312_v28 = vld [vmem:[%s2849_s8 + $0xc0] sm:$0xff]  ;;  %s2586_s20 = sshll.u32 %s2662_s25, 4  ;;  %s2587_s20 = int_to_ptr.vmem [resolvable:$false] %s2586_s20 }
  0x5c   : > { %2091 = vmatprep.mubr.msk.f32.mxu1 %vm348_vm0, %v2874_v18  ;;  %v2301_v25 = vpack.c.bf16 %v303_v23, %v302_v22  ;;  %v313_v29 = vld [vmem:[%s2849_s8 + $0xc8] sm:$0xff]  ;;  %v324_v30 = vld [vmem:[%s3186_s2] sm:$0xff]  ;;  %v326_v31 = vld [vmem:[%s3186_s2 + $0x10] sm:$0xff]  ;;  %v2305_v32 = vpack.c.bf16 %v305_v27, %v304_v26  ;;  %p2584_p6 = pnand %p2583_p4, %p2794_p12  ;;  %p2589_p10 = scmp.lt.s32.totalorder %s3133_s15, %s2587_s20 }
  0x5d   : > { %2280 = vmatpush3.bf16.msra.mxu0 %v2277_v9  ;;  %v2321_v33 = vpack.c.bf16 %v313_v29, %v312_v28  ;;  %v306_v34 = vld [vmem:[%s2849_s8 + $0x90] sm:$0xff]  ;;  %v307_v35 = vld [vmem:[%s2849_s8 + $0x98] sm:$0xff]  ;;  %330 = vperm.xlu0 %2482, %v324_v30   ;;  %v325_v38 = vld [vmem:[%s3186_s2 + $0x8] sm:$0xff] }
  0x5e   : > { %2296 = vmatpush3.bf16.msra.mxu1 %v2293_v13  ;;  %2282 = vmatprep.subr.bf16.mxu0 %v2281_v17  ;;  %v314_v36 = vld [vmem:[%s2849_s8 + $0xd0] sm:$0xff]  ;;  %v315_v37 = vld [vmem:[%s2849_s8 + $0xd8] sm:$0xff]  ;;  %v321_v39 = vld [vmem:[%s3185_s1 + $0x8] sm:$0xff]  ;;  %v2309_v42 = vpack.c.bf16 %v307_v35, %v306_v34  ;;  %p2585_p8 = pneg %p2584_p6 }
  0x5f   : > { %2298 = vmatprep.subr.bf16.mxu1 %v2297_v19  ;;  %340 = vperm.xlu1 %2483, %v326_v31   ;;  %v327_v40 = vld [vmem:[%s3186_s2 + $0x18] sm:$0xff]  ;;  %v322_v41 = vld [vmem:[%s3185_s1 + $0x10] sm:$0xff]  ;;  %v2325_v43 = vpack.c.bf16 %v315_v37, %v314_v36  ;;  %v308_v44 = vld [vmem:[%s2849_s8 + $0xa0] sm:$0xff] }
  0x60   : > { %v309_v45 = vld [vmem:[%s2849_s8 + $0xa8] sm:$0xff]  ;;  %v316_v46 = vld [vmem:[%s2849_s8 + $0xe0] sm:$0xff]  ;;  %v323_v48 = vld [vmem:[%s3185_s1 + $0x18] sm:$0xff] }
  0x61   : > { %2284 = vmatpush3.bf16.msra.mxu0 %v2281_v17  ;;  %335 = vperm.xlu0 %2482, %v325_v38   ;;  %v317_v47 = vld [vmem:[%s2849_s8 + $0xe8] sm:$0xff]  ;;  %v2313_v49 = vpack.c.bf16 %v309_v45, %v308_v44  ;;  %v310_v51 = vld [vmem:[%s2849_s8 + $0xb0] sm:$0xff]  ;;  %v311_v52 = vld [vmem:[%s2849_s8 + $0xb8] sm:$0xff]  ;;  %v2659_v45 = vmov 0.0|0.0  }
  0x62   : > { %2300 = vmatpush3.bf16.msra.mxu1 %v2297_v19  ;;  %2286 = vmatprep.subr.bf16.mxu0 %v2285_v24  ;;  %v2329_v50 = vpack.c.bf16 %v317_v47, %v316_v46  ;;  %v318_v53 = vld [vmem:[%s2849_s8 + $0xf0] sm:$0xff]  ;;  %v319_v54 = vld [vmem:[%s2849_s8 + $0xf8] sm:$0xff]  ;;  %v2317_v55 = vpack.c.bf16 %v311_v52, %v310_v51  ;;  %v2661_v46 = vmov 0.0   ;;  %vm3018_vm2 = vmpackc.low %vm348_vm0, %vm348_vm0  ;;  %s2588_s8 = scalar_lea.vmem %s2587_s20, 128 }
  0x63   : > { %2302 = vmatprep.subr.bf16.mxu1 %v2301_v25  ;;  %345 = vperm.xlu1 %2483, %v327_v40   ;;  %v2333_v56 = vpack.c.bf16 %v319_v54, %v318_v53  ;;  %p2590_p13 = scmp.lt.s32.totalorder %s2588_s8, %s2582_s29 }
  0x65   : > { %2288 = vmatpush3.bf16.msra.mxu0 %v2285_v24  ;;  %p2591_p3 = por %p2590_p13, %p2589_p10 }
  0x66   : > { %2304 = vmatpush3.bf16.msra.mxu1 %v2301_v25  ;;  %2306 = vmatprep.subr.bf16.mxu0 %v2305_v32 }
  0x67   : > { %2322 = vmatprep.subr.bf16.mxu1 %v2321_v33  ;;  %p2592_p7 = pnand %p2591_p3, %p2585_p8 }
  0x68   : > { %2070 = vmatmul.mubr.msk.f32.vlgmr.msra.gmra.mrb[0].mxu0 %vm348_vm0, %v321_v39 }
  0x69   : > { %2092 = vmatmul.mubr.msk.f32.vlgmr.msra.gmra.mrb[0].mxu1 %vm348_vm0, %v321_v39  ;;  %2308 = vmatpush3.bf16.msra.mxu0 %v2305_v32 }
  0x6a   : > { %2324 = vmatpush3.bf16.msra.mxu1 %v2321_v33  ;;  %2072 = vmatprep.mubr.msk.f32.mxu0 %vm348_vm0, %v322_v41 }
  0x6b   : > { %2310 = vmatprep.subr.bf16.mxu0 %v2309_v42  ;;  %2326 = vmatprep.subr.bf16.mxu1 %v2325_v43 }
  0x6c   : > { %2073 = vmatmul.mubr.msk.f32.gmra.mrb[2].mxu0 %vm348_vm0, %v323_v48  ;;  %2094 = vmatprep.mubr.msk.f32.mxu1 %vm348_vm0, %v322_v41 }
  0x6d   : > { %2312 = vmatpush3.bf16.msra.mxu0 %v2309_v42  ;;  %2095 = vmatmul.mubr.msk.f32.gmra.mrb[2].mxu1 %vm348_vm0, %v323_v48 }
  0x6e   : > { %2328 = vmatpush3.bf16.msra.mxu1 %v2325_v43  ;;  %2314 = vmatprep.subr.bf16.mxu0 %v2313_v49 }
  0x6f   : > { %2330 = vmatprep.subr.bf16.mxu1 %v2329_v50  ;;  %2113 = vmatprep.mubr.msk.f32.mxu0 %vm348_vm0, %v2874_v18 }
  0x70   : > { %2135 = vmatprep.mubr.msk.f32.mxu1 %vm348_vm0, %v2874_v18 }
  0x71   : > { %2316 = vmatpush3.bf16.msra.mxu0 %v2313_v49 }
  0x72   : > { %2332 = vmatpush3.bf16.msra.mxu1 %v2329_v50  ;;  %2318 = vmatprep.subr.bf16.mxu0 %v2317_v55 }
  0x73   : > { %2334 = vmatprep.subr.bf16.mxu1 %v2333_v56 }
  0x75   : > { %2320 = vmatpush3.bf16.msra.mxu0 %v2317_v55 }
  0x76   : > { %2336 = vmatpush3.bf16.msra.mxu1 %v2333_v56  ;;  %2337 = vmatprep.subr.bf16.mxu0 %v2659_v45 }
  0x77   : > { %2345 = vmatprep.subr.bf16.mxu1 %v2659_v45 }
  0x78   : > { %2114 = vmatmul.mubr.msk.f32.vlgmr.msra.gmra.mrb[4].mxu0 %vm348_vm0, %v321_v39 }
  0x79   : > { %2136 = vmatmul.mubr.msk.f32.vlgmr.msra.gmra.mrb[4].mxu1 %vm348_vm0, %v321_v39  ;;  %2116 = vmatprep.mubr.msk.f32.mxu0 %vm348_vm0, %v322_v41 }
  0x7a   : > { %2138 = vmatprep.mubr.msk.f32.mxu1 %vm348_vm0, %v322_v41 }
  0x7c   : > { %2117 = vmatmul.mubr.msk.f32.gmra.mrb[6].mxu0 %vm348_vm0, %v323_v48 }
  0x7d   : > { %2139 = vmatmul.mubr.msk.f32.gmra.mrb[6].mxu1 %vm348_vm0, %v323_v48  ;;  %2149 = vmatprep.mubr.msk.f32.mxu0 %vm2660_vm1, %v2661_v46 }
  0x7e   : > { %2160 = vmatprep.mubr.msk.f32.mxu1 %vm2660_vm1, %v2661_v46 }
  0xdc   : > { %v331_v57 = vpop.permute.xlu0 %330 }
  0xde   : > { %v341_v1 = vpop.permute.xlu1 %340 }
  0xe0   : > { %v336_v58 = vpop.permute.xlu0 %335 }
  0xe2   : > { %v346_v14 = vpop.permute.xlu1 %345 }
 0x13b   : > { %v2071_v59 = vpop.f32.mrb[0].mxu0 }
 0x13c   : > { %v2937_v60 = vadd.f32 %v2071_v59, %v336_v58  ;;  %v2093_v61 = vpop.f32.mrb[0].mxu1  ;;  %v427_v62 = vpop.f32.mrb[1].mxu0 }
 0x13d   : > { %v2939_v63 = vadd.f32 %v2093_v61, %v336_v58  ;;  %v512_v0 = vpop.f32.mrb[1].mxu1  ;;  %v2943_v3 = vadd.f32 %v427_v62, %v331_v57 }
 0x13e   : > { %v704_v2 = vsel %vm348_vm0, %v2937_v60, -inf  ;;  %v2951_v11 = vadd.f32 %v512_v0, %v331_v57 }
 0x13f   : > { %v716_v4 = vsel %vm348_vm0, %v2939_v63, -inf  ;;  %705 = vmax.xlane.f32.xlu1 %v704_v2  ;;  %v2074_v5 = vpop.f32.mrb[2].mxu0  ;;  %v701_v12 = vsel %vm348_vm0, %v2943_v3, -inf }
 0x140   : > { %717 = vmax.xlane.f32.xlu0 %v716_v4  ;;  %v437_v6 = vpop.f32.mrb[3].mxu0  ;;  %v2096_v7 = vpop.f32.mrb[2].mxu1  ;;  %v713_v16 = vsel %vm348_vm0, %v2951_v11, -inf  ;;  %v2961_v17 = vadd.f32 %v2074_v5, %v346_v14 }
 0x141   : > { %v2947_v8 = vadd.f32 %v437_v6, %v341_v1  ;;  %v522_v9 = vpop.f32.mrb[3].mxu1  ;;  %v2965_v20 = vadd.f32 %v2096_v7, %v346_v14 }
 0x142   : > { %v2949_v10 = vadd.f32 %v522_v9, %v341_v1  ;;  %v710_v19 = vsel %vm348_vm0, %v2961_v17, -inf }
 0x143   : > { %v707_v13 = vsel %vm348_vm0, %v2947_v8, -inf  ;;  %v722_v28 = vsel %vm348_vm0, %v2965_v20, -inf }
 0x144   : > { %702 = vmax.xlane.f32.xlu0 %v701_v12  ;;  %708 = vmax.xlane.f32.xlu1 %v707_v13  ;;  %v719_v15 = vsel %vm348_vm0, %v2949_v10, -inf }
 0x148   : > { %714 = vmax.xlane.f32.xlu0 %v713_v16  ;;  %720 = vmax.xlane.f32.xlu1 %v719_v15 }
 0x14b   : > { %v2115_v18 = vpop.f32.mrb[4].mxu0 }
 0x14c   : > { %v2137_v21 = vpop.f32.mrb[4].mxu1  ;;  %711 = vmax.xlane.f32.xlu0 %v710_v19  ;;  %v597_v22 = vpop.f32.mrb[5].mxu0  ;;  %v2969_v25 = vadd.f32 %v2115_v18, %v336_v58 }
 0x14d   : > { %v2967_v23 = vadd.f32 %v597_v22, %v331_v57  ;;  %v682_v24 = vpop.f32.mrb[5].mxu1  ;;  %v2977_v33 = vadd.f32 %v2137_v21, %v336_v58 }
 0x14e   : > { %v2971_v26 = vadd.f32 %v682_v24, %v331_v57  ;;  %v728_v35 = vsel %vm348_vm0, %v2969_v25, -inf }
 0x14f   : > { %v2118_v27 = vpop.f32.mrb[6].mxu0  ;;  %v725_v29 = vsel %vm348_vm0, %v2967_v23, -inf  ;;  %v740_v39 = vsel %vm348_vm0, %v2977_v33, -inf }
 0x150   : > { %v2140_v30 = vpop.f32.mrb[6].mxu1  ;;  %723 = vmax.xlane.f32.xlu0 %v722_v28  ;;  %v607_v31 = vpop.f32.mrb[7].mxu0  ;;  %726 = vmax.xlane.f32.xlu1 %v725_v29  ;;  %v737_v36 = vsel %vm348_vm0, %v2971_v26, -inf  ;;  %v2985_v37 = vadd.f32 %v2118_v27, %v346_v14 }
 0x151   : > { %v692_v32 = vpop.f32.mrb[7].mxu1  ;;  %v2979_v34 = vadd.f32 %v607_v31, %v341_v1  ;;  %v2993_v41 = vadd.f32 %v2140_v30, %v346_v14 }
 0x152   : > { %v2987_v38 = vadd.f32 %v692_v32, %v341_v1  ;;  %v734_v42 = vsel %vm348_vm0, %v2985_v37, -inf }
 0x153   : > { %v731_v40 = vsel %vm348_vm0, %v2979_v34, -inf  ;;  %v746_v44 = vsel %vm348_vm0, %v2993_v41, -inf }
 0x154   : > { %729 = vmax.xlane.f32.xlu0 %v728_v35  ;;  %738 = vmax.xlane.f32.xlu1 %v737_v36  ;;  %v743_v43 = vsel %vm348_vm0, %v2987_v38, -inf }
 0x158   : > { %741 = vmax.xlane.f32.xlu0 %v740_v39  ;;  %732 = vmax.xlane.f32.xlu1 %v731_v40 }
 0x15c   : > { %735 = vmax.xlane.f32.xlu0 %v734_v42  ;;  %744 = vmax.xlane.f32.xlu1 %v743_v43 }
 0x160   : > { %747 = vmax.xlane.f32.xlu0 %v746_v44 }
 0x1cc   : > { %v706_v47 = vpop.xlane.xlu1 %705 }
 0x1cd   : > { %v718_v48 = vpop.xlane.xlu0 %717  ;;  %v750_v49 = vsub.f32 %v2937_v60, %v706_v47 }
 0x1ce   : > { %v754_v50 = vsub.f32 %v2939_v63, %v718_v48 }
 0x1cf   : > { %v767_v51 = vmul.f32 1.442695, %v750_v49 }
 0x1d0   : > { %v775_v56 = vmul.f32 1.442695, %v754_v50 }
 0x1d1   : > { %v703_v52 = vpop.xlane.xlu0 %702  ;;  %v709_v53 = vpop.xlane.xlu1 %708  ;;  %2484 = vpow2.f32 %v767_v51 }
 0x1d2   : > { %v749_v54 = vsub.f32 %v2943_v3, %v703_v52  ;;  %v751_v57 = vsub.f32 %v2947_v8, %v709_v53 }
 0x1d4   : > { %v765_v55 = vmul.f32 1.442695, %v749_v54  ;;  %v769_v60 = vmul.f32 1.442695, %v751_v57 }
 0x1d5   : > { %v715_v58 = vpop.xlane.xlu0 %714  ;;  %v721_v61 = vpop.xlane.xlu1 %720 }
 0x1d6   : > { %2486 = vpow2.f32 %v765_v55  ;;  %v753_v59 = vsub.f32 %v2951_v11, %v715_v58  ;;  %v755_v63 = vsub.f32 %v2949_v10, %v721_v61  ;;  %v1178_v61 = vld [vmem:[#allocation5 + $0x28] sm:$0xff] }
 0x1d7   : > { %2488 = vpow2.f32 %v775_v56 }
 0x1d8   : > { %v773_v62 = vmul.f32 1.442695, %v753_v59  ;;  %v777_v3 = vmul.f32 1.442695, %v755_v63  ;;  %v1177_v59 = vld [vmem:[#allocation5 + $0x20] sm:$0xff]  ;;  %v1180_v63 = vld [vmem:[#allocation5 + $0x38] sm:$0xff] }
 0x1d9   : > { %v712_v0 = vpop.xlane.xlu0 %711 }
 0x1da   : > { %2490 = vpow2.f32 %v773_v62  ;;  %v752_v1 = vsub.f32 %v2961_v17, %v712_v0  ;;  %v2370_v62 = vpack.c.bf16 %v1178_v61, %v1177_v59 }
 0x1db   : > { %2492 = vpow2.f32 %v769_v60  ;;  %v2485_v8 = vpop.eup %2484  ;;  %v1179_v60 = vld [vmem:[#allocation5 + $0x30] sm:$0xff] }
 0x1dc   : > { %v771_v2 = vmul.f32 1.442695, %v752_v1  ;;  %v2373_v0 = vpack.c.bf16 %v1180_v63, %v1179_v60 }
 0x1dd   : > { %v724_v4 = vpop.xlane.xlu0 %723  ;;  %v727_v5 = vpop.xlane.xlu1 %726 }
 0x1de   : > { %2494 = vpow2.f32 %v771_v2  ;;  %v756_v6 = vsub.f32 %v2965_v20, %v724_v4  ;;  %v757_v7 = vsub.f32 %v2967_v23, %v727_v5 }
 0x1df   : > { %2496 = vpow2.f32 %v777_v3 }
 0x1e0   : > { %v2487_v9 = vpop.eup %2486  ;;  %v779_v11 = vmul.f32 1.442695, %v756_v6  ;;  %v781_v12 = vmul.f32 1.442695, %v757_v7 }
 0x1e1   : > { %v730_v13 = vpop.xlane.xlu0 %729  ;;  %v739_v14 = vpop.xlane.xlu1 %738  ;;  %v2338_v15 = vpack.c.bf16 %v2485_v8, %v2487_v9 }
 0x1e2   : > { %2498 = vpow2.f32 %v779_v11  ;;  %v758_v16 = vsub.f32 %v2969_v25, %v730_v13  ;;  %v761_v17 = vsub.f32 %v2971_v26, %v739_v14  ;;  %v2489_v18 = vpop.eup %2488 }
 0x1e3   : > { %2340 = vmatpush3.bf16.xpose.msk.msra.mxu0 %vm3018_vm2, %v2338_v15  ;;  %2500 = vpow2.f32 %v781_v12 }
 0x1e4   : > { %v2491_v19 = vpop.eup %2490  ;;  %v783_v20 = vmul.f32 1.442695, %v758_v16  ;;  %2341 = vmatprep.subr.bf16.mxu0 %v2659_v45  ;;  %v789_v21 = vmul.f32 1.442695, %v761_v17 }
 0x1e5   : > { %v742_v22 = vpop.xlane.xlu0 %741  ;;  %v733_v23 = vpop.xlane.xlu1 %732  ;;  %v2346_v24 = vpack.c.bf16 %v2489_v18, %v2491_v19 }
 0x1e6   : > { %2502 = vpow2.f32 %v783_v20  ;;  %v762_v27 = vsub.f32 %v2977_v33, %v742_v22  ;;  %v759_v25 = vsub.f32 %v2979_v34, %v733_v23  ;;  %v2493_v28 = vpop.eup %2492 }
 0x1e7   : > { %2348 = vmatpush3.bf16.xpose.msk.msra.mxu1 %vm3018_vm2, %v2346_v24  ;;  %2504 = vpow2.f32 %v789_v21 }
 0x1e8   : > { %v2495_v26 = vpop.eup %2494  ;;  %v791_v29 = vmul.f32 1.442695, %v762_v27  ;;  %2349 = vmatprep.subr.bf16.mxu1 %v2659_v45  ;;  %v785_v30 = vmul.f32 1.442695, %v759_v25 }
 0x1e9   : > { %v736_v31 = vpop.xlane.xlu0 %735  ;;  %v745_v32 = vpop.xlane.xlu1 %744  ;;  %v2342_v35 = vpack.c.bf16 %v2495_v26, %v2493_v28 }
 0x1ea   : > { %2506 = vpow2.f32 %v791_v29  ;;  %v760_v36 = vsub.f32 %v2985_v37, %v736_v31  ;;  %v763_v33 = vsub.f32 %v2987_v38, %v745_v32  ;;  %v2497_v39 = vpop.eup %2496  ;;  %v797_v37 = vld [vmem:[%s3187_s3] sm:$0xff]  ;;  %v1174_v32 = vld [vmem:[#allocation5 + $0x8] sm:$0xff] }
 0x1eb   : > { %2344 = vmatpush3.bf16.xpose.msk.msra.mxu0 %vm3018_vm2, %v2342_v35  ;;  %2508 = vpow2.f32 %v785_v30  ;;  %v1173_v31 = vld [vmem:[#allocation5] sm:$0xff] }
 0x1ec   : > { %v2499_v34 = vpop.eup %2498  ;;  %v787_v40 = vmul.f32 1.442695, %v760_v36  ;;  %2353 = vmatprep.subr.bf16.mxu0 %v2659_v45  ;;  %v793_v42 = vmul.f32 1.442695, %v763_v33  ;;  %v2394_v33 = vpack.c.bf16 %v1174_v32, %v1173_v31 }
 0x1ed   : > { %v748_v43 = vpop.xlane.xlu0 %747  ;;  %v2350_v44 = vpack.c.bf16 %v2499_v34, %v2497_v39  ;;  %v2501_v48 = vpop.eup %2500 }
 0x1ee   : > { %2510 = vpow2.f32 %v787_v40  ;;  %v764_v47 = vsub.f32 %v2993_v41, %v748_v43  ;;  %v1175_v40 = vld [vmem:[#allocation5 + $0x10] sm:$0xff] }
 0x1ef   : > { %2352 = vmatpush3.bf16.xpose.msk.msra.mxu1 %vm3018_vm2, %v2350_v44  ;;  %2512 = vpow2.f32 %v793_v42  ;;  %v1176_v42 = vld [vmem:[#allocation5 + $0x18] sm:$0xff] }
 0x1f0   : > { %v2503_v38 = vpop.eup %2502  ;;  %v795_v49 = vmul.f32 1.442695, %v764_v47  ;;  %2361 = vmatprep.subr.bf16.mxu1 %v2659_v45  ;;  %v2397_v44 = vpack.c.bf16 %v1176_v42, %v1175_v40 }
 0x1f1   : > { %v2354_v50 = vpack.c.bf16 %v2503_v38, %v2501_v48  ;;  %v2505_v51 = vpop.eup %2504 }
 0x1f2   : > { %2514 = vpow2.f32 %v795_v49  ;;  %2150 = vmatmul.mubr.msk.f32.vlgmr.msra.gmra.mrb[8].mxu0 %vm348_vm0, %v797_v37 }
 0x1f3   : > { %2356 = vmatpush3.bf16.xpose.msk.msra.mxu0 %vm3018_vm2, %v2354_v50  ;;  %2171 = vmatprep.mubr.msk.f32.mxu0 %vm2660_vm1, %v2661_v46 }
 0x1f4   : > { %v2507_v41 = vpop.eup %2506  ;;  %2357 = vmatprep.subr.bf16.mxu0 %v2659_v45 }
 0x1f5   : > { %v2362_v52 = vpack.c.bf16 %v2507_v41, %v2505_v51  ;;  %v2509_v53 = vpop.eup %2508 }
 0x1f6   : > { %2161 = vmatmul.mubr.msk.f32.vlgmr.msra.gmra.mrb[8].mxu1 %vm348_vm0, %v797_v37 }
 0x1f7   : > { %2364 = vmatpush3.bf16.xpose.msk.msra.mxu1 %vm3018_vm2, %v2362_v52  ;;  %2182 = vmatprep.mubr.msk.f32.mxu1 %vm2660_vm1, %v2661_v46 }
 0x1f8   : > { %v2511_v54 = vpop.eup %2510  ;;  %2365 = vmatprep.subr.bf16.mxu1 %v2659_v45 }
 0x1f9   : > { %v2358_v55 = vpack.c.bf16 %v2511_v54, %v2509_v53  ;;  %v2513_v56 = vpop.eup %2512 }
 0x1fb   : > { %2360 = vmatpush3.bf16.xpose.msk.msra.mxu0 %vm3018_vm2, %v2358_v55 }
 0x1fc   : > { %v2515_v57 = vpop.eup %2514  ;;  %2369 = vmatprep.subr.bf16.mxu0 %v2659_v45 }
 0x1fd   : > { %v2366_v58 = vpack.c.bf16 %v2515_v57, %v2513_v56 }
 0x1ff   : > { %2368 = vmatpush3.bf16.xpose.msk.msra.mxu1 %vm3018_vm2, %v2366_v58 }
 0x200   : > { %2375 = vmatprep.subr.bf16.mxu1 %v2659_v45 }
 0x202   : > { %2172 = vmatmul.mubr.msk.f32.vlgmr.msra.gmra.mrb[10].mxu0 %vm348_vm0, %v797_v37 }
 0x203   : > { %2193 = vmatprep.mubr.msk.f32.mxu0 %vm2660_vm1, %v2661_v46  ;;  %2371 = vmatpush3.bf16.msra.mxu0 %v2370_v62 }
 0x204   : > { %2372 = vmatprep.subr.bf16.mxu0 %v2659_v45 }
 0x206   : > { %2183 = vmatmul.mubr.msk.f32.vlgmr.msra.gmra.mrb[10].mxu1 %vm348_vm0, %v797_v37 }
 0x207   : > { %2204 = vmatprep.mubr.msk.f32.mxu1 %vm2660_vm1, %v2661_v46  ;;  %2377 = vmatpush3.bf16.msra.mxu1 %v2370_v62 }
 0x208   : > { %2378 = vmatprep.subr.bf16.mxu1 %v2659_v45  ;;  %2374 = vmatpush3.bf16.msra.mxu0 %v2373_v0 }
 0x209   : > { %2381 = vmatprep.subr.bf16.mxu0 %v2659_v45 }
 0x20b   : > { %2380 = vmatpush3.bf16.msra.mxu1 %v2373_v0 }
 0x20c   : > { %2387 = vmatprep.subr.bf16.mxu1 %v2659_v45 }
 0x2c5   : > { %v3072_v1 = vpop.f32.mrb[8].mxu0 }
 0x2c6   : > { %2516 = vrcp.f32 %v3072_v1  ;;  %v2151_v2 = vpop.f32.mrb[9].mxu0 }
 0x2c9   : > { %v3075_v3 = vpop.f32.mrb[8].mxu1 }
 0x2ca   : > { %2518 = vrcp.f32 %v3075_v3  ;;  %v2162_v4 = vpop.f32.mrb[9].mxu1 }
 0x2d0   : > { %v2517_v5 = vpop.eup %2516 }
 0x2d1   : > { %v1133_v6 = vmul.f32 %v2517_v5, %v3072_v1 }
 0x2d3   : > { %v1137_v7 = vsub.f32 2.0, %v1133_v6 }
 0x2d4   : > { %v2519_v8 = vpop.eup %2518 }
 0x2d5   : > { %v1141_v9 = vmul.f32 %v2517_v5, %v1137_v7  ;;  %v1134_v11 = vmul.f32 %v2519_v8, %v3075_v3  ;;  %v3080_v10 = vpop.f32.mrb[10].mxu0 }
 0x2d6   : > { %2520 = vrcp.f32 %v3080_v10  ;;  %v2173_v12 = vpop.f32.mrb[11].mxu0 }
 0x2d7   : > { %v1161_v13 = vrot.slane %v1141_v9, 1  ;;  %v1138_v14 = vsub.f32 2.0, %v1134_v11  ;;  %v1149_v47 = vrot.slane %v1141_v9, 2 }
 0x2d9   : > { %v1169_v15 = vmul.f32 %v1161_v13, %v3072_v1  ;;  %v1142_v16 = vmul.f32 %v2519_v8, %v1138_v14  ;;  %v3084_v17 = vpop.f32.mrb[10].mxu1  ;;  %v1157_v37 = vmul.f32 %v1149_v47, %v3072_v1 }
 0x2da   : > { %2522 = vrcp.f32 %v3084_v17  ;;  %v2184_v18 = vpop.f32.mrb[11].mxu1 }
 0x2db   : > { %v1182_v19 = vrot.slane %v1169_v15, 1  ;;  %v1162_v20 = vrot.slane %v1142_v16, 1  ;;  %v1150_v38 = vrot.slane %v1142_v16, 2 }
 0x2dd   : > { %v1170_v21 = vmul.f32 %v1162_v20, %v3075_v3  ;;  %2194 = vmatmul.mubr.msk.f32.vlgmr.msra.gmra.mrb[12].mxu0 %vm1183_vm3, %v1182_v19  ;;  %v1158_v49 = vmul.f32 %v1150_v38, %v3075_v3 }
 0x2de   : > { %2383 = vmatpush3.bf16.msra.mxu0 %v2370_v62  ;;  %2215 = vmatprep.mubr.msk.f32.mxu0 %vm2660_vm1, %v2661_v46 }
 0x2df   : > { %v1257_v22 = vrot.slane %v1170_v21, 1  ;;  %2384 = vmatprep.subr.bf16.mxu0 %v2659_v45 }
 0x2e0   : > { %v2521_v23 = vpop.eup %2520 }
 0x2e1   : > { %v1135_v24 = vmul.f32 %v2521_v23, %v3080_v10  ;;  %2205 = vmatmul.mubr.msk.f32.vlgmr.msra.gmra.mrb[12].mxu1 %vm1183_vm3, %v1257_v22 }
 0x2e2   : > { %2386 = vmatpush3.bf16.msra.mxu0 %v2373_v0  ;;  %2389 = vmatpush3.bf16.msra.mxu1 %v2370_v62 }
 0x2e3   : > { %v1139_v27 = vsub.f32 2.0, %v1135_v24  ;;  %2390 = vmatprep.subr.bf16.mxu1 %v2659_v45  ;;  %2393 = vmatprep.subr.bf16.mxu0 %v2659_v45 }
 0x2e4   : > { %v2523_v25 = vpop.eup %2522  ;;  %2226 = vmatprep.mubr.msk.f32.mxu1 %vm2660_vm1, %v2661_v46 }
 0x2e5   : > { %v1143_v28 = vmul.f32 %v2521_v23, %v1139_v27  ;;  %v1136_v26 = vmul.f32 %v2523_v25, %v3084_v17 }
 0x2e6   : > { %2392 = vmatpush3.bf16.msra.mxu1 %v2373_v0 }
 0x2e7   : > { %v1163_v29 = vrot.slane %v1143_v28, 1  ;;  %v1140_v30 = vsub.f32 2.0, %v1136_v26  ;;  %2399 = vmatprep.subr.bf16.mxu1 %v2659_v45  ;;  %v1151_v50 = vrot.slane %v1143_v28, 2 }
 0x2e9   : > { %v1171_v35 = vmul.f32 %v1163_v29, %v3080_v10  ;;  %v1144_v36 = vmul.f32 %v2523_v25, %v1140_v30  ;;  %v1159_v51 = vmul.f32 %v1151_v50, %v3080_v10 }
 0x2eb   : > { %v1331_v39 = vrot.slane %v1171_v35, 1  ;;  %v1164_v34 = vrot.slane %v1144_v36, 1  ;;  %v1152_v41 = vrot.slane %v1144_v36, 2 }
 0x2ed   : > { %v1172_v43 = vmul.f32 %v1164_v34, %v3084_v17  ;;  %2216 = vmatmul.mubr.msk.f32.vlgmr.msra.gmra.mrb[14].mxu0 %vm1183_vm3, %v1331_v39  ;;  %v1160_v52 = vmul.f32 %v1152_v41, %v3084_v17 }
 0x2ee   : > { %2395 = vmatpush3.bf16.msra.mxu0 %v2394_v33  ;;  %2237 = vmatprep.mubr.msk.f32.mxu0 %vm2660_vm1, %v2661_v46 }
 0x2ef   : > { %v1405_v48 = vrot.slane %v1172_v43, 1  ;;  %2396 = vmatprep.subr.bf16.mxu0 %v2659_v45 }
 0x2f1   : > { %2227 = vmatmul.mubr.msk.f32.vlgmr.msra.gmra.mrb[14].mxu1 %vm1183_vm3, %v1405_v48 }
 0x2f2   : > { %2398 = vmatpush3.bf16.msra.mxu0 %v2397_v44  ;;  %2401 = vmatpush3.bf16.msra.mxu1 %v2394_v33 }
 0x2f3   : > { %2402 = vmatprep.subr.bf16.mxu1 %v2659_v45  ;;  %2405 = vmatprep.subr.bf16.mxu0 %v2659_v45 }
 0x2f4   : > { %2248 = vmatprep.mubr.msk.f32.mxu1 %vm2660_vm1, %v2661_v46 }
 0x2f5   : > { %2238 = vmatmul.mubr.msk.f32.vlgmr.msra.gmra.mrb[16].mxu0 %vm1183_vm3, %v1157_v37 }
 0x2f6   : > { %2404 = vmatpush3.bf16.msra.mxu1 %v2397_v44  ;;  %2407 = vmatpush3.bf16.msra.mxu0 %v2394_v33 }
 0x2f7   : > { %2408 = vmatprep.subr.bf16.mxu0 %v2659_v45  ;;  %2411 = vmatprep.subr.bf16.mxu1 %v2659_v45 }
 0x2f8   : > { %2259 = vmatprep.mubr.msk.f32.mxu0 %vm2660_vm1, %v2661_v46 }
 0x2f9   : > { %2249 = vmatmul.mubr.msk.f32.vlgmr.msra.gmra.mrb[16].mxu1 %vm1183_vm3, %v1158_v49 }
 0x2fa   : > { %2410 = vmatpush3.bf16.msra.mxu0 %v2397_v44  ;;  %2413 = vmatpush3.bf16.msra.mxu1 %v2394_v33 }
 0x2fb   : > { %2414 = vmatprep.subr.bf16.mxu1 %v2659_v45  ;;  %2270 = vmatprep.mubr.msk.f32.mxu1 %vm2660_vm1, %v2661_v46  ;;  %v1770_v46 = vld [vmem:[%s3189_s5] sm:$0x1] }
 0x2fd   : > { %2260 = vmatmul.mubr.msk.f32.vlgmr.msra.gmra.mrb[18].mxu0 %vm1183_vm3, %v1159_v51 }
 0x2fe   : > { %2416 = vmatpush3.bf16.msra.mxu1 %v2397_v44 }
 0x301   : > { %2271 = vmatmul.mubr.msk.f32.vlgmr.msra.gmra.mrb[18].mxu1 %vm1183_vm3, %v1160_v52 }
 0x3b0   : > { %v1252_v53 = vpop.f32.mrb[12].mxu0 }
 0x3b1   : > { %v2195_v54 = vpop.f32.mrb[13].mxu0 }
 0x3b4   : > { %v1326_v55 = vpop.f32.mrb[12].mxu1 }
 0x3b5   : > { %v2206_v56 = vpop.f32.mrb[13].mxu1 }
 0x3c0   : > { %v1400_v57 = vpop.f32.mrb[14].mxu0 }
 0x3c1   : > { %v2217_v58 = vpop.f32.mrb[15].mxu0 }
 0x3c4   : > { %v1474_v59 = vpop.f32.mrb[14].mxu1 }
 0x3c5   : > { %v2228_v61 = vpop.f32.mrb[15].mxu1 }
 0x3c8   : > { %v1547_v45 = vpop.f32.mrb[16].mxu0 }
 0x3c9   : > { %v1548_v62 = vadd.f32 %v1547_v45, %v1252_v53  ;;  %v2239_v60 = vpop.f32.mrb[17].mxu0 }
 0x3cb   : > { %v1771_v63 = vadd.f32 %v1770_v46, %v1548_v62 }
 0x3cc   : > { %v1620_v0 = vpop.f32.mrb[16].mxu1 }
 0x3cd   : > { %v1775_v1 = vmax.f32 %v1771_v63, 0.0  ;;  %v1621_v2 = vadd.f32 %v1620_v0, %v1326_v55  ;;  %v2250_v3 = vpop.f32.mrb[17].mxu1 }
 0x3cf   : > { %1780 = vst.msk [vmem:[%s285_s30] sm:$0x1] %vm1779_vm4, %v1775_v1  ;;  %v1772_v4 = vadd.f32 %v1770_v46, %v1621_v2 }
 0x3d0   : > { %v1693_v5 = vpop.f32.mrb[18].mxu0 }
 0x3d1   : > { %v1776_v6 = vmax.f32 %v1772_v4, 0.0  ;;  %v1694_v7 = vadd.f32 %v1693_v5, %v1400_v57  ;;  %v2261_v8 = vpop.f32.mrb[19].mxu0 }
 0x3d3   : > { %1781 = vst.msk [vmem:[%s285_s30 + $0x1] sm:$0x1] %vm1779_vm4, %v1776_v6  ;;  %v1773_v9 = vadd.f32 %v1770_v46, %v1694_v7 }
 0x3d4   : > { %v1766_v11 = vpop.f32.mrb[18].mxu1 }
 0x3d5   : > { %v1777_v10 = vmax.f32 %v1773_v9, 0.0  ;;  %v1767_v12 = vadd.f32 %v1766_v11, %v1474_v59  ;;  %v2272_v13 = vpop.f32.mrb[19].mxu1 }
 0x3d7   : > { %1782 = vst.msk [vmem:[%s285_s30 + $0x2] sm:$0x1] %vm1779_vm4, %v1777_v10  ;;  %v1774_v14 = vadd.f32 %v1770_v46, %v1767_v12 }
 0x3d9   : > { %v1778_v15 = vmax.f32 %v1774_v14, 0.0 }
 0x3db   : > { %1783 = vst.msk [vmem:[%s285_s30 + $0x3] sm:$0x1] %vm1779_vm4, %v1778_v15 }
 0x3dc   : > { %2595 = shalt.err (!%p2592_p7)
}
 0x3dd   : > { %s2596_s26 = scalar_lea.hbm %s3139_s7, 64  ;;  %s2600_s11 = scalar_lea.hbm %s3190_s6, 128 }
 0x3de   : > { %p2597_p9 = scmp.ne.s32.totalorder %s3139_s7, %s2596_s26  ;;  %p2601_p5 = scmp.lt.u32.totalorder %s3139_s7, %s3190_s6 }
 0x3df   : > { %p2602_p11 = scmp.lt.u32.totalorder %s2600_s11, %s2596_s26  ;;  %p2604_p4 = scmp.lt.u32.totalorder %s2596_s26, %s3139_s7 }
 0x3e0   : > { %p2598_p1 = pnand %p2597_p9, %p2794_p12 }
 0x3e1   : > { %p2603_p2 = por %p2602_p11, %p2601_p5 }
 0x3e2   : > { %p2599_p0 = pneg %p2598_p1 }
 0x3e3   : > { %p2605_p6 = por %p2604_p4, %p2603_p2 }
 0x3e5   : > { %p2606_p8 = pnand %p2605_p6, %p2599_p0 }
 0x3e7   : > { %2609 = shalt.err (!%p2606_p8)
}
 0x3e8   : > { %s2663_s18 = smov 16   ;;  %s2664_s17 = smov 1  }
 0x3e9   : > { %2423 = dma.vmem_to_hbm [thread:$0]  (%p2794_p12), %s3133_s15, 64, %s3139_s7, %s1785_s27, %s2663_s18, %s2663_s18, %s2664_s17  }
 0x3ea PF: > { %s1813_s29 = sand.u32 1, %s2640_s21   ;;  %p3207_p10 = scmp.ne.s32.totalorder %s3195_s28, 0 }
 0x3eb   : > { %p3208_p13 = scmp.ge.s32.totalorder %s2652_s24, 2  ;;  %s1814_s25 = scalar_lea.sflag [#allocation4], %s1813_s29 }
 0x3ed   : > { %p2434_p3 = pnand %p3208_p13, %p3207_p10 }
 0x3ef   : > { %2635 = dma.done.wait (!%p2434_p3), %s1814_s25, 64  }
 0x3f0   : > { %2637 = vsyncadd (!%p2434_p3), %s1814_s25, 4294967232  ;;  %p20_p7 = scmp.ge.s32.totalorder %s2756_s9, 4   ;;  %s3209_s21 = smov %s2644_s22 }
 0x3f1   : > { %s3210_s22 = smov %s2648_s23  ;;  %s3211_s23 = smov %s2790_s13 }
 0x3f2   : > { %s3212_s24 = smov %s2756_s9  ;;  %22 = sbr.rel (!%p20_p7) target bundleno = 6 (0x6), region = 93 }
 0x3f9   :  { %1819 = vsyncpa [#allocation3], 1 }
 0x3fa   :  { %1821 = vsyncpa [#allocation3 + $0x1], 1 }
 0x3fb   :  { %1822 = vsyncpa [#allocation6], 1 }
 0x3fc   :  { %1823 = vsyncpa [#allocation4], 1 }
 0x3fd   :  { %1825 = vsyncpa [#allocation4 + $0x1], 1 }

</bundles_post_ra>
